<compile_context>
chip_gen: v7x
topology: tpu7x:2x2x1
jax: 0.10.0
libtpu: 0.0.40
codegen_flags: <defaults>
</compile_context>

<pallas_src>
import functools

import jax
import jax.numpy as jnp
from jax.experimental import pallas as pl
from jax.experimental.pallas import tpu as pltpu


def _round_up(x: int, m: int) -> int:
    return ((x + m - 1) // m) * m


def _num_tensorcores() -> int:
    """2 TensorCores per chip on v7x, 1 on v5e/v6e.  Fail safe to 1."""
    try:
        kind = jax.devices()[0].device_kind.lower()
    except Exception:  # pragma: no cover
        return 1
    return 2 if "v7" in kind else 1


def _make_bce_kernel(B, C, tb, tc, nb, needs_mask, assume_binary_targets):
    """Builds the kernel body with shapes / mask decision baked in as Python ints."""

    def kernel(s_ref, t_ref, out_ref, acc_ref):
        c = pl.program_id(0)   # core (megacore) axis
        i = pl.program_id(1)   # batch-tile index within this core's slice
        j = pl.program_id(2)   # class-tile index (reduction axis, last)

        @pl.when((i == 0) & (j == 0))
        def _():
            acc_ref[...] = jnp.zeros_like(acc_ref)

        # Load in native dtype, cast to f32 in-registers (precision for 1-s & logs).
        s = s_ref[...].astype(jnp.float32)
        t = t_ref[...].astype(jnp.float32)

        if assume_binary_targets:
            # Single-log fast path (EUP relief on v7x); only valid for t in {0,1}.
            x = jnp.where(t >= 0.5, s, 1.0 - s)
            per = -jnp.maximum(jnp.log(x), jnp.float32(-100.0))
        else:
            # PyTorch clamps log(x) at -100 inside binary_cross_entropy.
            # Clamp BEFORE combining with t so masked/edge garbage never makes 0*inf.
            log_s = jnp.maximum(jnp.log(s), jnp.float32(-100.0))
            log_1ms = jnp.maximum(jnp.log(1.0 - s), jnp.float32(-100.0))
            # FMA-free form of -(t*log_s + (1-t)*log_1ms).
            per = -(log_1ms + t * (log_s - log_1ms))

        if needs_mask:
            # Zero contributions from the out-of-range tail of partial edge blocks
            # (and from redundant clamped blocks on the megacore split).
            row = (c * nb + i) * tb + jax.lax.broadcasted_iota(jnp.int32, (tb, tc), 0)
            col = j * tc + jax.lax.broadcasted_iota(jnp.int32, (tb, tc), 1)
            per = jnp.where((row < B) & (col < C), per, jnp.float32(0.0))

        # Per-step lane reduce (XLU slot is idle here) into a narrow accumulator.
        acc_ref[...] += jnp.sum(per, axis=-1, keepdims=True)

        @pl.when((i == pl.num_programs(1) - 1) & (j == pl.num_programs(2) - 1))
        def _():
            out_ref[0, 0] = jnp.sum(acc_ref[...])

    return kernel


@functools.partial(jax.jit, static_argnames=("assume_binary_targets",))
def binary_cross_entropy_loss(scores: jax.Array, targets: jax.Array,
                              *, assume_binary_targets: bool = False) -> jax.Array:
    """Pallas equivalent of BinaryCrossEntropyLoss.forward.

    scores, targets: (B, C) probabilities / float targets (any float dtype).
    Returns scalar:  mean BCE over all elements * C  (== sum(per_elem) / B).
    """
    assert scores.shape == targets.shape and scores.ndim == 2
    B, C = scores.shape

    NC = _num_tensorcores()  # leading "parallel" axis: 2 on v7x, 1 on v5e/v6e

    # ---- tile selection -----------------------------------------------------
    # Sublane multiple follows the tightest-packed input dtype (f32:8, bf16:16, 8b:32).
    min_item = min(scores.dtype.itemsize, targets.dtype.itemsize)
    sub_mult = {4: 8, 2: 16, 1: 32}.get(min_item, 8)
    max_item = max(scores.dtype.itemsize, targets.dtype.itemsize)

    # Class tile: multiple of 128 lanes, capped at 1024.
    tc = min(_round_up(C, 128), 1024)

    # Batch tile: ~4 MiB per (largest-dtype) input block, multiple of sub_mult,
    # never bigger than the per-core batch actually needs.
    target_bytes = 4 * 1024 * 1024
    tb = max(sub_mult, (target_bytes // (tc * max_item)) // sub_mult * sub_mult)
    tb = min(tb, _round_up(pl.cdiv(B, NC), sub_mult))

    nb_total = pl.cdiv(B, tb)        # total batch tiles
    nb = pl.cdiv(nb_total, NC)       # batch tiles per core
    nj = pl.cdiv(C, tc)              # class tiles

    # Need masking if the grid over-covers the array (partial edge blocks or
    # redundant clamped blocks on the NC split).
    needs_mask = (NC * nb * tb != B) or (nj * tc != C)

    # Batch-block index for core c, step i (clamped so every DMA stays in bounds;
    # redundant re-reads from clamping are zeroed by the mask).
    if NC == 1:
        in_idx = lambda c, i, j: (i, j)
    else:
        last_blk = nb_total - 1
        in_idx = lambda c, i, j: (jnp.minimum(c * nb + i, last_blk), j)

    kernel = _make_bce_kernel(B, C, tb, tc, nb, needs_mask, assume_binary_targets)

    bytes_accessed = B * C * (scores.dtype.itemsize + targets.dtype.itemsize) + 4 * NC
    cost = pl.CostEstimate(flops=8 * B * C,
                           transcendentals=2 * B * C,
                           bytes_accessed=bytes_accessed)

    partials = pl.pallas_call(
        kernel,
        out_shape=jax.ShapeDtypeStruct((NC, 1), jnp.float32),
        grid_spec=pltpu.PrefetchScalarGridSpec(
            num_scalar_prefetch=0,
            grid=(NC, nb, nj),
            in_specs=[
                pl.BlockSpec((tb, tc), in_idx),
                pl.BlockSpec((tb, tc), in_idx),
            ],
            out_specs=pl.BlockSpec((1, 1), lambda c, i, j: (c, 0),
                                   memory_space=pltpu.SMEM),
            scratch_shapes=[pltpu.VMEM((tb, 1), jnp.float32)],
        ),
        compiler_params=pltpu.CompilerParams(
            dimension_semantics=("parallel", "arbitrary", "arbitrary"),
            vmem_limit_bytes=32 * 1024 * 1024,
        ),
        cost_estimate=cost,
    )(scores, targets)

    # mean over all elements * C  ==  total_sum / B   (the *unpadded* B)
    return jnp.sum(partials) / jnp.float32(B)


def _reference(scores, targets):
    s = scores.astype(jnp.float32)
    t = targets.astype(jnp.float32)
    log_s = jnp.maximum(jnp.log(s), -100.0)
    log_1ms = jnp.maximum(jnp.log(1.0 - s), -100.0)
    per = -(t * log_s + (1.0 - t) * log_1ms)
    return jnp.mean(per) * scores.shape[1]


if __name__ == "__main__":
    key = jax.random.PRNGKey(0)
    k1, k2, k3, k4 = jax.random.split(key, 4)

    # Case 1: aligned multi-label shape, f32 inputs (unmasked fast path).
    B, C = 16, 128
    scores = jax.random.uniform(k1, (B, C), dtype=jnp.float32,
                                minval=1e-4, maxval=1.0 - 1e-4)
    targets = (jax.random.uniform(k2, (B, C)) > 0.5).astype(jnp.float32)

    loss = jax.block_until_ready(binary_cross_entropy_loss(scores, targets))
    ref = _reference(scores, targets)
    assert jnp.allclose(loss, ref, rtol=1e-5, atol=1e-4), (loss, ref)

    # Case 2: non-tile-aligned shape with bf16 inputs (in-kernel tail masking,
    # native-dtype load + in-kernel f32 cast).
    B2, C2 = 6, 200
    scores2 = jax.random.uniform(k3, (B2, C2), dtype=jnp.float32,
                                 minval=1e-3, maxval=1.0 - 1e-3).astype(jnp.bfloat16)
    targets2 = (jax.random.uniform(k4, (B2, C2)) > 0.5).astype(jnp.bfloat16)

    loss2 = jax.block_until_ready(binary_cross_entropy_loss(scores2, targets2))
    ref2 = _reference(scores2, targets2)
    assert jnp.allclose(loss2, ref2, rtol=1e-4, atol=1e-3), (loss2, ref2)

    print("KERNEL_OK")
</pallas_src>

<mosaic_0001>
module attributes {stable_mosaic.version = 11 : i64} {
  func.func @kernel(%arg0: i32, %arg1: i32, %arg2: i32, %arg3: memref<16x128xf32, #tpu.memory_space<vmem>>, %arg4: memref<16x128xf32, #tpu.memory_space<vmem>>, %arg5: memref<1x1xf32, #tpu.memory_space<smem>>, %arg6: memref<16x1xf32, #tpu.memory_space<vmem>>) attributes {dimension_semantics = [#tpu.dimension_semantics<parallel>, #tpu.dimension_semantics<arbitrary>, #tpu.dimension_semantics<arbitrary>], iteration_bounds = array<i64: 1, 1, 1>, scalar_prefetch = 0 : i64, scratch_operands = 1 : i64, tpu.core_type = #tpu.core_type<tc>, window_params = [{transform_indices = @transform_0, window_bounds = array<i64: 16, 128>}, {transform_indices = @transform_1, window_bounds = array<i64: 16, 128>}, {transform_indices = @transform_2, window_bounds = array<i64: 1, 1>}]} {
    %c0_i32 = arith.constant 0 : i32
    %0 = arith.cmpi eq, %arg1, %c0_i32 : i32
    %c0_i32_0 = arith.constant 0 : i32
    %1 = arith.cmpi eq, %arg2, %c0_i32_0 : i32
    %2 = arith.andi %0, %1 : i1
    %3 = arith.extui %2 : i1 to i32
    %c0_i32_1 = arith.constant 0 : i32
    %4 = arith.cmpi ne, %3, %c0_i32_1 : i32
    scf.if %4 {
      %cst_16 = arith.constant 0.000000e+00 : f32
      %30 = vector.broadcast %cst_16 : f32 to vector<16x1xf32>
      %c0_17 = arith.constant 0 : index
      %c0_18 = arith.constant 0 : index
      %31 = vector.load %arg6[%c0_17, %c0_18] : memref<16x1xf32, #tpu.memory_space<vmem>>, vector<16x1xf32>
      tpu.vector_store %arg6[%c0_17, %c0_18], %30 {strides = array<i32>} : memref<16x1xf32, #tpu.memory_space<vmem>>, vector<16x1xf32>,
    } else {
    }
    %c0 = arith.constant 0 : index
    %c0_2 = arith.constant 0 : index
    %5 = vector.load %arg3[%c0, %c0_2] : memref<16x128xf32, #tpu.memory_space<vmem>>, vector<16x128xf32>
    %c0_3 = arith.constant 0 : index
    %c0_4 = arith.constant 0 : index
    %6 = vector.load %arg4[%c0_3, %c0_4] : memref<16x128xf32, #tpu.memory_space<vmem>>, vector<16x128xf32>
    %7 = math.log %5 : vector<16x128xf32>
    %cst = arith.constant -1.000000e+02 : f32
    %8 = vector.broadcast %cst : f32 to vector<16x128xf32>
    %9 = arith.maximumf %7, %8 : vector<16x128xf32>
    %cst_5 = arith.constant 1.000000e+00 : f32
    %10 = vector.broadcast %cst_5 : f32 to vector<16x128xf32>
    %11 = arith.subf %10, %5 : vector<16x128xf32>
    %12 = math.log %11 : vector<16x128xf32>
    %cst_6 = arith.constant -1.000000e+02 : f32
    %13 = vector.broadcast %cst_6 : f32 to vector<16x128xf32>
    %14 = arith.maximumf %12, %13 : vector<16x128xf32>
    %15 = arith.subf %9, %14 : vector<16x128xf32>
    %16 = arith.mulf %6, %15 : vector<16x128xf32>
    %17 = arith.addf %14, %16 : vector<16x128xf32>
    %cst_7 = arith.constant 0.000000e+00 : f32
    %18 = vector.broadcast %cst_7 : f32 to vector<16x128xf32>
    %19 = arith.subf %18, %17 : vector<16x128xf32>
    %c0_8 = arith.constant 0 : index
    %c0_9 = arith.constant 0 : index
    %20 = vector.load %arg6[%c0_8, %c0_9] : memref<16x1xf32, #tpu.memory_space<vmem>>, vector<16x1xf32>
    %cst_10 = arith.constant dense<0.000000e+00> : vector<16xf32>
    %21 = vector.multi_reduction <add>, %19, %cst_10 [1] : vector<16x128xf32> to vector<16xf32>
    %22 = vector.shape_cast %21 : vector<16xf32> to vector<16x1xf32>
    %23 = arith.addf %20, %22 : vector<16x1xf32>
    %c0_11 = arith.constant 0 : index
    %c0_12 = arith.constant 0 : index
    %24 = vector.load %arg6[%c0_11, %c0_12] : memref<16x1xf32, #tpu.memory_space<vmem>>, vector<16x1xf32>
    tpu.vector_store %arg6[%c0_11, %c0_12], %23 {strides = array<i32>} : memref<16x1xf32, #tpu.memory_space<vmem>>, vector<16x1xf32>,
    %c0_i32_13 = arith.constant 0 : i32
    %25 = arith.cmpi eq, %arg1, %c0_i32_13 : i32
    %c0_i32_14 = arith.constant 0 : i32
    %26 = arith.cmpi eq, %arg2, %c0_i32_14 : i32
    %27 = arith.andi %25, %26 : i1
    %28 = arith.extui %27 : i1 to i32
    %c0_i32_15 = arith.constant 0 : i32
    %29 = arith.cmpi ne, %28, %c0_i32_15 : i32
    scf.if %29 {
      %c0_16 = arith.constant 0 : index
      %c0_17 = arith.constant 0 : index
      %30 = vector.load %arg6[%c0_16, %c0_17] : memref<16x1xf32, #tpu.memory_space<vmem>>, vector<16x1xf32>
      %31 = vector.shape_cast %30 : vector<16x1xf32> to vector<1x16x1xf32>
      %cst_18 = arith.constant dense<0.000000e+00> : vector<1xf32>
      %32 = vector.multi_reduction <add>, %31, %cst_18 [1, 2] : vector<1x16x1xf32> to vector<1xf32>
      %33 = vector.shape_cast %32 : vector<1xf32> to vector<1x1x1xf32>
      %34 = vector.extract %33[0, 0, 0] : f32 from vector<1x1x1xf32>
      %c0_19 = arith.constant 0 : index
      %c0_20 = arith.constant 0 : index
      %35 = memref.load %arg5[%c0_19, %c0_20] : memref<1x1xf32, #tpu.memory_space<smem>>
      memref.store %34, %arg5[%c0_19, %c0_20] : memref<1x1xf32, #tpu.memory_space<smem>>
    } else {
    }
    return
  }
  func.func @transform_0(%arg0: i32, %arg1: i32, %arg2: i32) -> (i32, i32) {
    %c0_i32 = arith.constant 0 : i32
    return %arg1, %arg2 : i32, i32
  }
  func.func @transform_1(%arg0: i32, %arg1: i32, %arg2: i32) -> (i32, i32) {
    %c0_i32 = arith.constant 0 : i32
    return %arg1, %arg2 : i32, i32
  }
  func.func @transform_2(%arg0: i32, %arg1: i32, %arg2: i32) -> (i32, i32) {
    %c0_i32 = arith.constant 0 : i32
    %c0_i32_0 = arith.constant 0 : i32
    return %arg0, %c0_i32 : i32, i32
  }
}

</mosaic_0001>

<bundles_post_ra>
// kernel: binary_cross_entropy_loss.1
= control target key start
LH: loop header
LB: loop body
LE: loop exit
PB: predicated region body
PF: predicated region fallthrough
CT: control target
= control target key end

     0   :  { %7 = vsyncpa [#allocation4], 0  ;;  %s258_s0 = inlined_call_operand.hbm [shape: f32[16,128], index: 0, kind: input, shape index: {}]   ;;  %s259_s1 = inlined_call_operand.hbm [shape: f32[16,128], index: 1, kind: input, shape index: {}]   ;;  %s260_s2 = inlined_call_operand.hbm [shape: f32[1,1], index: 2, kind: output, shape index: {}]  }
   0x1   :  { %8 = vsyncpa [#allocation7], 0 }
   0x2   :  { %9 = vsyncpa [#allocation5], 0  ;;  %s195_s9 = smov [#allocation3]   ;;  %s135_s13 = scalar_lea.hbm %s258_s0, 256 }
   0x3   :  { %s15_s10 = sshll.u32 %s195_s9, 4  ;;  %p136_p0 = scmp.ne.s32.totalorder %s258_s0, %s135_s13  ;;  %s16_s10 = int_to_ptr.vmem [resolvable:$true] %s15_s10 }
   0x4   :  { %p139_p1 = scmp.lt.u32.totalorder %s135_s13, %s258_s0 }
   0x6   :  { %p141_p2 = pnand %p139_p1, %p136_p0 }
   0x8   :  { %144 = shalt.err (!%p141_p2)
}
   0x9   :  { %s145_s18 = scalar_lea.vmem %s16_s10, 256  ;;  %p150_p4 = scmp.lt.s32.totalorder %s16_s10, %s16_s10 }
   0xa   :  { %p146_p3 = scmp.ne.s32.totalorder %s16_s10, %s145_s18  ;;  %p151_p5 = scmp.lt.s32.totalorder %s145_s18, %s145_s18 }
   0xc   :  { %p152_p6 = por %p151_p5, %p150_p4 }
   0xe   :  { %p153_p7 = pnand %p152_p6, %p146_p3 }
  0x10   :  { %156 = shalt.err (!%p153_p7)
}
  0x11   :  { %s196_s19 = smov 128   ;;  %s197_s20 = smov 8  }
  0x12   :  { %21 = dma.hbm_to_vmem [thread:$0]  %s258_s0, 256, %s16_s10, [#allocation4], %s196_s19, %s196_s19, %s197_s20  }
  0x13   :  { %s198_s23 = smov [#allocation6]   ;;  %s157_s27 = scalar_lea.hbm %s259_s1, 256 }
  0x14   :  { %s27_s24 = sshll.u32 %s198_s23, 4  ;;  %p158_p8 = scmp.ne.s32.totalorder %s259_s1, %s157_s27  ;;  %s28_s24 = int_to_ptr.vmem [resolvable:$true] %s27_s24 }
  0x15   :  { %p161_p9 = scmp.lt.u32.totalorder %s157_s27, %s259_s1 }
  0x17   :  { %p163_p10 = pnand %p161_p9, %p158_p8 }
  0x19   :  { %166 = shalt.err (!%p163_p10)
}
  0x1a   :  { %s167_s4 = scalar_lea.vmem %s28_s24, 256  ;;  %p172_p12 = scmp.lt.s32.totalorder %s28_s24, %s28_s24 }
  0x1b   :  { %p168_p11 = scmp.ne.s32.totalorder %s28_s24, %s167_s4  ;;  %p173_p13 = scmp.lt.s32.totalorder %s167_s4, %s167_s4 }
  0x1d   :  { %p174_p0 = por %p173_p13, %p172_p12 }
  0x1f   :  { %p175_p1 = pnand %p174_p0, %p168_p11 }
  0x21   :  { %178 = shalt.err (!%p175_p1)
}
  0x22   :  { %33 = dma.hbm_to_vmem [thread:$0]  %s259_s1, 256, %s28_s24, [#allocation7], %s196_s19, %s196_s19, %s197_s20  }
  0x23   :  { %189 = dma.done.wait [#allocation4], 256  }
  0x24   :  { %190 = vsyncadd [#allocation4], 4294967040 }
  0x25   :  { %191 = dma.done.wait [#allocation7], 256  }
  0x26   :  { %192 = vsyncadd [#allocation7], 4294967040  ;;  %vm46_vm0 = vcmask 7168   ;;  %v199_v0 = vmov 0.0   ;;  %v49_v1 = vld [vmem:[#allocation3] sm:$0xff]  ;;  %v50_v2 = vld [vmem:[#allocation3 + $0x8] sm:$0xff] }
  0x27   :  { %47 = vst.msk [vmem:[#allocation2] sm:$0xff] %vm46_vm0, %v199_v0  ;;  %48 = vst.msk [vmem:[#allocation2 + $0x8] sm:$0xff] %vm46_vm0, %v199_v0  ;;  %127 = vlog2.f32 %v49_v1  ;;  %v59_v3 = vsub.f32 1.0, %v49_v1  ;;  %v60_v4 = vsub.f32 1.0, %v50_v2  ;;  %v51_v16 = vld [vmem:[#allocation6] sm:$0xff]  ;;  %v52_v19 = vld [vmem:[#allocation6 + $0x8] sm:$0xff] }
  0x28   :  { %129 = vlog2.f32 %v50_v2  ;;  %s179_s8 = scalar_lea.hbm %s260_s2, 16 }
  0x29   :  { %131 = vlog2.f32 %v59_v3  ;;  %p180_p2 = scmp.ne.s32.totalorder %s260_s2, %s179_s8  ;;  %p183_p3 = scmp.lt.u32.totalorder %s179_s8, %s260_s2 }
  0x2a   :  { %133 = vlog2.f32 %v60_v4 }
  0x2b   :  { %p185_p4 = pnand %p183_p3, %p180_p2 }
  0x2e   :  { %v75_v27 = vld [vmem:[#allocation2] sm:$0xff]  ;;  %v76_v30 = vld [vmem:[#allocation2 + $0x8] sm:$0xff] }
  0x31   :  { %v128_v5 = vpop.eup %127 }
  0x32   :  { %v130_v6 = vpop.eup %129  ;;  %v54_v7 = vmul.f32 0.6931472, %v128_v5 }
  0x33   :  { %v132_v8 = vpop.eup %131  ;;  %v56_v9 = vmul.f32 0.6931472, %v130_v6 }
  0x34   :  { %v134_v10 = vpop.eup %133  ;;  %v57_v11 = vmax.f32 %v54_v7, -100.0  ;;  %v62_v12 = vmul.f32 0.6931472, %v132_v8 }
  0x35   :  { %v58_v13 = vmax.f32 %v56_v9, -100.0  ;;  %v64_v14 = vmul.f32 0.6931472, %v134_v10 }
  0x36   :  { %v65_v15 = vmax.f32 %v62_v12, -100.0 }
  0x37   :  { %v66_v17 = vmax.f32 %v64_v14, -100.0 }
  0x38   :  { %v67_v18 = vsub.f32 %v57_v11, %v65_v15 }
  0x39   :  { %v68_v20 = vsub.f32 %v58_v13, %v66_v17 }
  0x3a   :  { %v69_v21 = vmul.f32 %v67_v18, %v51_v16 }
  0x3b   :  { %v70_v22 = vmul.f32 %v68_v20, %v52_v19 }
  0x3c   :  { %v71_v23 = vadd.f32 %v69_v21, %v65_v15 }
  0x3d   :  { %v72_v24 = vadd.f32 %v70_v22, %v66_v17 }
  0x3e   :  { %v73_v25 = vsub.f32 0.0, %v71_v23 }
  0x3f   :  { %v74_v26 = vsub.f32 0.0, %v72_v24 }
  0x40   :  { %77 = vadd.xlane.f32.xlu0 %v73_v25 }
  0x44   :  { %79 = vadd.xlane.f32.xlu0 %v74_v26 }
  0xcd   :  { %v78_v28 = vpop.xlane.xlu0 %77 }
  0xce   :  { %v81_v29 = vadd.f32 %v78_v28, %v75_v27 }
  0xd0   :  { %84 = vst.msk [vmem:[#allocation2] sm:$0xff] %vm46_vm0, %v81_v29 }
  0xd1   :  { %v80_v31 = vpop.xlane.xlu0 %79 }
  0xd2   :  { %v82_v32 = vadd.f32 %v80_v31, %v76_v30 }
  0xd4   :  { %85 = vst.msk [vmem:[#allocation2 + $0x8] sm:$0xff] %vm46_vm0, %v82_v32 }
  0xd7   :  { %v88_v33 = vld [vmem:[#allocation2] sm:$0xff] }
  0xd8   :  { %v90_v35 = vsel %vm46_vm0, %v88_v33, 0.0 }
  0xdb   :  { %v89_v34 = vld [vmem:[#allocation2 + $0x8] sm:$0xff] }
  0xdc   :  { %v91_v36 = vsel %vm46_vm0, %v89_v34, 0.0 }
  0xdd   :  { %v92_v37 = vadd.f32 %v91_v36, %v90_v35 }
  0xdf   :  { %93 = vadd.xlane.f32.xlu1 %v92_v37 }
 0x16c   :  { %v94_v38 = vpop.xlane.xlu1 %93 }
 0x16d   :  { %v95_v39 = vrot.slane %v94_v38, 4 }
 0x16f   :  { %v96_v40 = vadd.f32 %v95_v39, %v94_v38 }
 0x171   :  { %v97_v41 = vrot.slane %v96_v40, 2 }
 0x173   :  { %v98_v42 = vadd.f32 %v97_v41, %v96_v40 }
 0x175   :  { %v99_v43 = vrot.slane %v98_v42, 1 }
 0x177   :  { %v100_v44 = vadd.f32 %v99_v43, %v98_v42 }
 0x179   :  { %119 = vpush %v100_v44 }
 0x1aa   :  { %s120_s1 = spop %119 }
 0x1ab   :  { %103 = sst [smem:[#allocation8]] %s120_s1 }
 0x1ac   :  { %188 = shalt.err (!%p185_p4)
}
 0x1ad   :  { %s200_s13 = smov [#allocation8]  }
 0x1ae   :  { %111 = dma.smem_to_hbm %s200_s13, 16, %s260_s2, [#allocation5]  }
 0x1af   :  { %193 = dma.done.wait [#allocation5], 16  }
 0x1b0   :  { %194 = vsyncadd [#allocation5], 4294967280 }
 0x1b1   :  { %115 = sfence }
 0x1b2   :  { %116 = vsyncpa [#allocation4], 1 }
 0x1b3   :  { %117 = vsyncpa [#allocation7], 1 }
 0x1b4   :  { %118 = vsyncpa [#allocation5], 1 }

</bundles_post_ra>
